<compile_context>
chip_gen: v7x
topology: tpu7x:2x2x1
jax: 0.10.0
libtpu: 0.0.40
codegen_flags: <defaults>
</compile_context>

<pallas_src>
import functools

import jax
import jax.numpy as jnp
from jax.experimental import pallas as pl
from jax.experimental.pallas import tpu as pltpu

_LN_EPS = 1e-5


def _layernorm(x, gamma, beta):
    # Single-pass moments: sum and sum-of-squares reduced together (two
    # independent XLU reductions instead of two dependent ones).
    inv_n = 1.0 / x.shape[-1]
    mean = jnp.sum(x, axis=-1, keepdims=True) * inv_n
    ex2 = jnp.sum(x * x, axis=-1, keepdims=True) * inv_n
    var = jnp.maximum(ex2 - mean * mean, 0.0)
    return (x - mean) * jax.lax.rsqrt(var + _LN_EPS) * gamma + beta


def _fdh_kernel(latent_ref, action_ref,
                wl1, wl2, wl3, wa1, wa2, wm1l, wm1a, wm2, wm3, wm4,
                tbl_h, tbl_a, tbl_o,
                o_ref):
    f32 = jnp.float32

    def mm(x, w_ref):
        # bf16 MXU operands, f32 accumulation.
        return jnp.dot(x.astype(jnp.bfloat16), w_ref[...], preferred_element_type=f32)

    ah = wa1.shape[-1]  # action hidden width before padding (100)

    # ---- latent branch: Linear -> LayerNorm -> Linear+ReLU -> Linear+ReLU
    hl = mm(latent_ref[...], wl1) + tbl_h[0:1, :]
    hl = _layernorm(hl, tbl_h[1:2, :], tbl_h[2:3, :])
    hl = jnp.maximum(mm(hl, wl2) + tbl_h[3:4, :], 0.0)
    hl = jnp.maximum(mm(hl, wl3) + tbl_h[4:5, :], 0.0)

    # ---- action branch: Linear -> LayerNorm -> Linear+ReLU
    # (width padded 100 -> 128 only after the LayerNorm; padded cols are exactly 0)
    ha = mm(action_ref[...], wa1) + tbl_a[0:1, :ah]
    ha = _layernorm(ha, tbl_a[1:2, :ah], tbl_a[2:3, :ah])
    ha = jnp.maximum(mm(ha, wa2) + tbl_a[3:4, :], 0.0)          # [tm, 128]

    # ---- merged MLP: concat([hl, ha]) @ Wm1 computed as a split matmul.
    h = jnp.maximum(mm(hl, wm1l) + mm(ha, wm1a) + tbl_h[5:6, :], 0.0)
    h = jnp.maximum(mm(h, wm2) + tbl_h[6:7, :], 0.0)
    h = jnp.maximum(mm(h, wm3) + tbl_h[7:8, :], 0.0)

    y = _layernorm(mm(h, wm4) + tbl_o[0:1, :], tbl_o[1:2, :], tbl_o[2:3, :])
    o_ref[...] = jnp.tanh(y).astype(o_ref.dtype)


@functools.partial(jax.jit, static_argnames=("tile_m",))
def forward_dynamics_head(latent, action, params, *, tile_m=1024):
    latent = latent.astype(jnp.float32)
    action = action.astype(jnp.float32)          # mirrors `action.to(torch.float32)`
    lead = latent.shape[:-1]
    latent_dim = latent.shape[-1]
    action_dim = action.shape[-1]
    H = params["wl1"].shape[1]
    AH = params["wa1"].shape[1]                  # 100 in the reference module
    AHP = max(128, pl.cdiv(AH, 128) * 128)       # lane-padded action hidden width

    l2d = latent.reshape(-1, latent_dim)
    a2d = action.reshape(-1, action_dim)
    n = l2d.shape[0]

    # Row tile: multiple of 8, capped so grid >= 2 when N allows (v7x megacore).
    # Tail rows use Pallas partial-block masking (no full-batch pad copy).
    tile_m = max(8, (tile_m // 8) * 8)
    n8 = max(8, pl.cdiv(n, 8) * 8)
    half = pl.cdiv(pl.cdiv(n8, 2), 8) * 8
    tm = min(tile_m, n8, half)

    bf16 = jnp.bfloat16
    f32 = jnp.float32
    p = params

    def pad_cols(x, width):
        return jnp.pad(x, ((0, 0), (0, width - x.shape[-1])))

    # --- MXU operands cast to bf16 once; action width padded after its LN (exact).
    wl1 = p["wl1"].astype(bf16)
    wl2 = p["wl2"].astype(bf16)
    wl3 = p["wl3"].astype(bf16)
    wa1 = p["wa1"].astype(bf16)
    wa2 = pad_cols(p["wa2"], AHP).astype(bf16)                         # [AH, 128]
    wm1l = p["wm1"][:H].astype(bf16)                                   # [H, H]
    wm1a = jnp.pad(p["wm1"][H:], ((0, AHP - AH), (0, 0))).astype(bf16)  # [128, H]
    wm2 = p["wm2"].astype(bf16)
    wm3 = p["wm3"].astype(bf16)
    wm4 = p["wm4"].astype(bf16)

    # --- Pack the 13 (1, d) bias / LN-affine rows into 3 tables (row order fixed).
    tbl_h = jnp.concatenate(
        [p["bl1"], p["gl"], p["betal"], p["bl2"], p["bl3"],
         p["bm1"], p["bm2"], p["bm3"]], axis=0).astype(f32)            # [8, H]
    tbl_a = jnp.concatenate(
        [pad_cols(p["ba1"], AHP), pad_cols(p["ga"], AHP),
         pad_cols(p["betaa"], AHP), pad_cols(p["ba2"], AHP)], axis=0).astype(f32)  # [4, 128]
    tbl_o = jnp.concatenate([p["bm4"], p["gm"], p["betam"]], axis=0).astype(f32)   # [3, Ld]

    const_ops = (wl1, wl2, wl3, wa1, wa2, wm1l, wm1a, wm2, wm3, wm4,
                 tbl_h, tbl_a, tbl_o)
    const_bytes = sum(int(w.size) * w.dtype.itemsize for w in const_ops)

    # --- Explicit VMEM budget (conservative: counts weights x2 even though they
    # are requested single-buffered) so the kernel fits v7x's 64 MiB / v5e's
    # small default scoped VMEM.
    def vmem_need(t):
        io = 2 * 2 * t * (2 * latent_dim + action_dim) * 4   # double-buffered row tiles
        live = 8 * t * max(H, AHP) * 4                        # live f32 intermediates (rough)
        return 2 * const_bytes + io + live

    VMEM_SOFT_CAP = 48 << 20
    while tm > 8 and vmem_need(tm) > VMEM_SOFT_CAP:
        tm = max(8, ((tm // 2) // 8) * 8)
    vmem_limit = int(min(max(vmem_need(tm) + (4 << 20), 32 << 20), 64 << 20))

    grid = (pl.cdiv(n, tm),)
    row_spec = lambda d: pl.BlockSpec((tm, d), lambda i: (i, 0))
    # Constant index_map -> weights stay VMEM-resident; Buffered(1) avoids a
    # pointless second buffer for blocks that never change.
    const_spec = lambda w: pl.BlockSpec(w.shape, lambda i: (0, 0),
                                        pipeline_mode=pl.Buffered(1))

    flops_row = 2 * (latent_dim * H + 2 * H * H
                     + action_dim * AH + AH * AH
                     + H * H + AH * H
                     + 2 * H * H + H * latent_dim)
    cost = pl.CostEstimate(
        flops=int(n) * int(flops_row),
        transcendentals=int(n) * int(latent_dim + 3),         # tanh per elem + 3 LN rsqrt
        bytes_accessed=4 * int(n) * (2 * latent_dim + action_dim) + int(const_bytes),
    )

    out = pl.pallas_call(
        _fdh_kernel,
        out_shape=jax.ShapeDtypeStruct((n, latent_dim), jnp.float32),
        grid=grid,
        in_specs=[row_spec(latent_dim), row_spec(action_dim)]
                 + [const_spec(w) for w in const_ops],
        out_specs=pl.BlockSpec((tm, latent_dim), lambda i: (i, 0)),
        compiler_params=pltpu.CompilerParams(
            dimension_semantics=("parallel",),
            vmem_limit_bytes=vmem_limit),
        cost_estimate=cost,
    )(l2d, a2d, *const_ops)

    return out.reshape(*lead, latent_dim)


def init_params(key, latent_dim, action_dim, hidden_dim):
    """Deterministic synthetic init (stand-in for torch weight_init)."""
    # TODO(synk): torch weight_init (orthogonal init etc.) not replicated; only
    # parameter values differ, forward semantics are unchanged.
    H = hidden_dim

    def linear(k, fan_in, fan_out):
        kw, kb = jax.random.split(k)
        bound = 1.0 / jnp.sqrt(jnp.float32(fan_in))
        w = jax.random.uniform(kw, (fan_in, fan_out), jnp.float32, -bound, bound)
        b = jax.random.uniform(kb, (1, fan_out), jnp.float32, -bound, bound)
        return w, b

    def ln(k, dim):
        kg, kb = jax.random.split(k)
        g = 1.0 + 0.1 * jax.random.normal(kg, (1, dim), jnp.float32)
        b = 0.1 * jax.random.normal(kb, (1, dim), jnp.float32)
        return g, b

    ks = jax.random.split(key, 12)
    p = {}
    p["wl1"], p["bl1"] = linear(ks[0], latent_dim, H)
    p["gl"], p["betal"] = ln(ks[1], H)
    p["wl2"], p["bl2"] = linear(ks[2], H, H)
    p["wl3"], p["bl3"] = linear(ks[3], H, H)
    p["wa1"], p["ba1"] = linear(ks[4], action_dim, 100)
    p["ga"], p["betaa"] = ln(ks[5], 100)
    p["wa2"], p["ba2"] = linear(ks[6], 100, 100)
    p["wm1"], p["bm1"] = linear(ks[7], H + 100, H)
    p["wm2"], p["bm2"] = linear(ks[8], H, H)
    p["wm3"], p["bm3"] = linear(ks[9], H, H)
    p["wm4"], p["bm4"] = linear(ks[10], H, latent_dim)
    p["gm"], p["betam"] = ln(ks[11], latent_dim)
    return p


def _reference(latent, action, params, *, matmul_dtype=jnp.float32):
    """Pure-JAX reference (real concat, unsplit Wm1)."""
    p = params
    d = matmul_dtype
    mm = lambda x, w: jnp.dot(x.astype(d), w.astype(d), preferred_element_type=jnp.float32)

    def ln(x, g, b):
        m = jnp.mean(x, axis=-1, keepdims=True)
        v = jnp.mean((x - m) ** 2, axis=-1, keepdims=True)
        return (x - m) * jax.lax.rsqrt(v + _LN_EPS) * g + b

    l = latent.astype(jnp.float32)
    a = action.astype(jnp.float32)

    hl = mm(l, p["wl1"]) + p["bl1"]
    hl = ln(hl, p["gl"], p["betal"])
    hl = jax.nn.relu(mm(hl, p["wl2"]) + p["bl2"])
    hl = jax.nn.relu(mm(hl, p["wl3"]) + p["bl3"])

    ha = mm(a, p["wa1"]) + p["ba1"]
    ha = ln(ha, p["ga"], p["betaa"])
    ha = jax.nn.relu(mm(ha, p["wa2"]) + p["ba2"])

    m_ = jnp.concatenate([hl, ha], axis=-1)
    h = jax.nn.relu(mm(m_, p["wm1"]) + p["bm1"])
    h = jax.nn.relu(mm(h, p["wm2"]) + p["bm2"])
    h = jax.nn.relu(mm(h, p["wm3"]) + p["bm3"])
    y = ln(mm(h, p["wm4"]) + p["bm4"], p["gm"], p["betam"])
    return jnp.tanh(y)


if __name__ == "__main__":
    key = jax.random.PRNGKey(0)
    kl, ka, kp = jax.random.split(key, 3)

    batch = 8
    latent_dim = 16
    action_dim = 8
    hidden_dim = 32

    latent = jax.random.normal(kl, (batch, latent_dim), jnp.float32)
    action = jax.random.normal(ka, (batch, action_dim), jnp.float32)
    params = init_params(kp, latent_dim, action_dim, hidden_dim)

    out = jax.block_until_ready(forward_dynamics_head(latent, action, params))
    assert out.shape == (batch, latent_dim), out.shape
    assert bool(jnp.all(jnp.isfinite(out)))

    # Structural check vs a bf16-matmul reference (same numerics regime).
    ref_bf16 = _reference(latent, action, params, matmul_dtype=jnp.bfloat16)
    assert jnp.allclose(out, ref_bf16, atol=1e-2, rtol=1e-2), \
        float(jnp.max(jnp.abs(out - ref_bf16)))

    # Accuracy check vs the full-f32 reference (bf16 MXU operands => looser tol).
    ref_f32 = _reference(latent, action, params)
    assert jnp.allclose(out, ref_f32, atol=5e-2, rtol=5e-2), \
        float(jnp.max(jnp.abs(out - ref_f32)))

    print("KERNEL_OK")
</pallas_src>

<mosaic_0001>
module attributes {stable_mosaic.version = 11 : i64} {
  func.func @_fdh_kernel(%arg0: i32, %arg1: memref<8x16xf32, #tpu.memory_space<vmem>>, %arg2: memref<8x8xf32, #tpu.memory_space<vmem>>, %arg3: memref<16x32xbf16, #tpu.memory_space<vmem>>, %arg4: memref<32x32xbf16, #tpu.memory_space<vmem>>, %arg5: memref<32x32xbf16, #tpu.memory_space<vmem>>, %arg6: memref<8x100xbf16, #tpu.memory_space<vmem>>, %arg7: memref<100x128xbf16, #tpu.memory_space<vmem>>, %arg8: memref<32x32xbf16, #tpu.memory_space<vmem>>, %arg9: memref<128x32xbf16, #tpu.memory_space<vmem>>, %arg10: memref<32x32xbf16, #tpu.memory_space<vmem>>, %arg11: memref<32x32xbf16, #tpu.memory_space<vmem>>, %arg12: memref<32x16xbf16, #tpu.memory_space<vmem>>, %arg13: memref<8x32xf32, #tpu.memory_space<vmem>>, %arg14: memref<4x128xf32, #tpu.memory_space<vmem>>, %arg15: memref<3x16xf32, #tpu.memory_space<vmem>>, %arg16: memref<8x16xf32, #tpu.memory_space<vmem>>) attributes {dimension_semantics = [#tpu.dimension_semantics<parallel>], iteration_bounds = array<i64: 1>, scalar_prefetch = 0 : i64, scratch_operands = 0 : i64, tpu.core_type = #tpu.core_type<tc>, window_params = [{transform_indices = @transform_0, window_bounds = array<i64: 8, 16>}, {transform_indices = @transform_1, window_bounds = array<i64: 8, 8>}, {pipeline_mode = #tpu.pipeline_mode<synchronous>, transform_indices = @transform_2, window_bounds = array<i64: 16, 32>}, {pipeline_mode = #tpu.pipeline_mode<synchronous>, transform_indices = @transform_3, window_bounds = array<i64: 32, 32>}, {pipeline_mode = #tpu.pipeline_mode<synchronous>, transform_indices = @transform_4, window_bounds = array<i64: 32, 32>}, {pipeline_mode = #tpu.pipeline_mode<synchronous>, transform_indices = @transform_5, window_bounds = array<i64: 8, 100>}, {pipeline_mode = #tpu.pipeline_mode<synchronous>, transform_indices = @transform_6, window_bounds = array<i64: 100, 128>}, {pipeline_mode = #tpu.pipeline_mode<synchronous>, transform_indices = @transform_7, window_bounds = array<i64: 32, 32>}, {pipeline_mode = #tpu.pipeline_mode<synchronous>, transform_indices = @transform_8, window_bounds = array<i64: 128, 32>}, {pipeline_mode = #tpu.pipeline_mode<synchronous>, transform_indices = @transform_9, window_bounds = array<i64: 32, 32>}, {pipeline_mode = #tpu.pipeline_mode<synchronous>, transform_indices = @transform_10, window_bounds = array<i64: 32, 32>}, {pipeline_mode = #tpu.pipeline_mode<synchronous>, transform_indices = @transform_11, window_bounds = array<i64: 32, 16>}, {pipeline_mode = #tpu.pipeline_mode<synchronous>, transform_indices = @transform_12, window_bounds = array<i64: 8, 32>}, {pipeline_mode = #tpu.pipeline_mode<synchronous>, transform_indices = @transform_13, window_bounds = array<i64: 4, 128>}, {pipeline_mode = #tpu.pipeline_mode<synchronous>, transform_indices = @transform_14, window_bounds = array<i64: 3, 16>}, {transform_indices = @transform_15, window_bounds = array<i64: 8, 16>}]} {
    %c0 = arith.constant 0 : index
    %c0_0 = arith.constant 0 : index
    %0 = vector.load %arg1[%c0, %c0_0] : memref<8x16xf32, #tpu.memory_space<vmem>>, vector<8x16xf32>
    %1 = arith.truncf %0 : vector<8x16xf32> to vector<8x16xbf16>
    %c0_1 = arith.constant 0 : index
    %c0_2 = arith.constant 0 : index
    %2 = vector.load %arg3[%c0_1, %c0_2] : memref<16x32xbf16, #tpu.memory_space<vmem>>, vector<16x32xbf16>
    %cst = arith.constant dense<0.000000e+00> : vector<8x32xf32>
    %3 = tpu.matmul %1, %2, %cst {dimension_numbers = #tpu.dot_dimension_numbers<[1], [0], [0], [1], [0, 0, 1, 1], [], []>} : vector<8x16xbf16>, vector<16x32xbf16>, vector<8x32xf32> -> vector<8x32xf32>
    %c0_3 = arith.constant 0 : index
    %c0_4 = arith.constant 0 : index
    %4 = vector.load %arg13[%c0_3, %c0_4] : memref<8x32xf32, #tpu.memory_space<vmem>>, vector<1x32xf32>
    %5 = vector.broadcast %4 : vector<1x32xf32> to vector<8x32xf32>
    %6 = arith.addf %3, %5 : vector<8x32xf32>
    %c1 = arith.constant 1 : index
    %c0_5 = arith.constant 0 : index
    %7 = vector.load %arg13[%c1, %c0_5] : memref<8x32xf32, #tpu.memory_space<vmem>>, vector<1x32xf32>
    %c2 = arith.constant 2 : index
    %c0_6 = arith.constant 0 : index
    %8 = vector.load %arg13[%c2, %c0_6] : memref<8x32xf32, #tpu.memory_space<vmem>>, vector<1x32xf32>
    %cst_7 = arith.constant dense<0.000000e+00> : vector<8xf32>
    %9 = vector.multi_reduction <add>, %6, %cst_7 [1] : vector<8x32xf32> to vector<8xf32>
    %10 = vector.shape_cast %9 : vector<8xf32> to vector<8x1xf32>
    %cst_8 = arith.constant 3.125000e-02 : f32
    %11 = vector.broadcast %cst_8 : f32 to vector<8x1xf32>
    %12 = arith.mulf %10, %11 : vector<8x1xf32>
    %13 = arith.mulf %6, %6 : vector<8x32xf32>
    %cst_9 = arith.constant dense<0.000000e+00> : vector<8xf32>
    %14 = vector.multi_reduction <add>, %13, %cst_9 [1] : vector<8x32xf32> to vector<8xf32>
    %15 = vector.shape_cast %14 : vector<8xf32> to vector<8x1xf32>
    %cst_10 = arith.constant 3.125000e-02 : f32
    %16 = vector.broadcast %cst_10 : f32 to vector<8x1xf32>
    %17 = arith.mulf %15, %16 : vector<8x1xf32>
    %18 = arith.mulf %12, %12 : vector<8x1xf32>
    %19 = arith.subf %17, %18 : vector<8x1xf32>
    %cst_11 = arith.constant 0.000000e+00 : f32
    %20 = vector.broadcast %cst_11 : f32 to vector<8x1xf32>
    %21 = arith.maximumf %19, %20 : vector<8x1xf32>
    %22 = vector.broadcast %12 : vector<8x1xf32> to vector<8x32xf32>
    %23 = arith.subf %6, %22 : vector<8x32xf32>
    %cst_12 = arith.constant 9.99999974E-6 : f32
    %24 = vector.broadcast %cst_12 : f32 to vector<8x1xf32>
    %25 = arith.addf %21, %24 : vector<8x1xf32>
    %26 = math.rsqrt %25 : vector<8x1xf32>
    %27 = vector.broadcast %26 : vector<8x1xf32> to vector<8x32xf32>
    %28 = arith.mulf %23, %27 : vector<8x32xf32>
    %29 = vector.broadcast %7 : vector<1x32xf32> to vector<8x32xf32>
    %30 = arith.mulf %28, %29 : vector<8x32xf32>
    %31 = vector.broadcast %8 : vector<1x32xf32> to vector<8x32xf32>
    %32 = arith.addf %30, %31 : vector<8x32xf32>
    %33 = arith.truncf %32 : vector<8x32xf32> to vector<8x32xbf16>
    %c0_13 = arith.constant 0 : index
    %c0_14 = arith.constant 0 : index
    %34 = vector.load %arg4[%c0_13, %c0_14] : memref<32x32xbf16, #tpu.memory_space<vmem>>, vector<32x32xbf16>
    %cst_15 = arith.constant dense<0.000000e+00> : vector<8x32xf32>
    %35 = tpu.matmul %33, %34, %cst_15 {dimension_numbers = #tpu.dot_dimension_numbers<[1], [0], [0], [1], [0, 0, 1, 1], [], []>} : vector<8x32xbf16>, vector<32x32xbf16>, vector<8x32xf32> -> vector<8x32xf32>
    %c3 = arith.constant 3 : index
    %c0_16 = arith.constant 0 : index
    %36 = vector.load %arg13[%c3, %c0_16] : memref<8x32xf32, #tpu.memory_space<vmem>>, vector<1x32xf32>
    %37 = vector.broadcast %36 : vector<1x32xf32> to vector<8x32xf32>
    %38 = arith.addf %35, %37 : vector<8x32xf32>
    %cst_17 = arith.constant 0.000000e+00 : f32
    %39 = vector.broadcast %cst_17 : f32 to vector<8x32xf32>
    %40 = arith.maximumf %38, %39 : vector<8x32xf32>
    %41 = arith.truncf %40 : vector<8x32xf32> to vector<8x32xbf16>
    %c0_18 = arith.constant 0 : index
    %c0_19 = arith.constant 0 : index
    %42 = vector.load %arg5[%c0_18, %c0_19] : memref<32x32xbf16, #tpu.memory_space<vmem>>, vector<32x32xbf16>
    %cst_20 = arith.constant dense<0.000000e+00> : vector<8x32xf32>
    %43 = tpu.matmul %41, %42, %cst_20 {dimension_numbers = #tpu.dot_dimension_numbers<[1], [0], [0], [1], [0, 0, 1, 1], [], []>} : vector<8x32xbf16>, vector<32x32xbf16>, vector<8x32xf32> -> vector<8x32xf32>
    %c4 = arith.constant 4 : index
    %c0_21 = arith.constant 0 : index
    %44 = vector.load %arg13[%c4, %c0_21] : memref<8x32xf32, #tpu.memory_space<vmem>>, vector<1x32xf32>
    %45 = vector.broadcast %44 : vector<1x32xf32> to vector<8x32xf32>
    %46 = arith.addf %43, %45 : vector<8x32xf32>
    %cst_22 = arith.constant 0.000000e+00 : f32
    %47 = vector.broadcast %cst_22 : f32 to vector<8x32xf32>
    %48 = arith.maximumf %46, %47 : vector<8x32xf32>
    %c0_23 = arith.constant 0 : index
    %c0_24 = arith.constant 0 : index
    %49 = vector.load %arg2[%c0_23, %c0_24] : memref<8x8xf32, #tpu.memory_space<vmem>>, vector<8x8xf32>
    %50 = arith.truncf %49 : vector<8x8xf32> to vector<8x8xbf16>
    %c0_25 = arith.constant 0 : index
    %c0_26 = arith.constant 0 : index
    %51 = vector.load %arg6[%c0_25, %c0_26] : memref<8x100xbf16, #tpu.memory_space<vmem>>, vector<8x100xbf16>
    %cst_27 = arith.constant dense<0.000000e+00> : vector<8x100xf32>
    %52 = tpu.matmul %50, %51, %cst_27 {dimension_numbers = #tpu.dot_dimension_numbers<[1], [0], [0], [1], [0, 0, 1, 1], [], []>} : vector<8x8xbf16>, vector<8x100xbf16>, vector<8x100xf32> -> vector<8x100xf32>
    %c0_28 = arith.constant 0 : index
    %c0_29 = arith.constant 0 : index
    %53 = vector.load %arg14[%c0_28, %c0_29] : memref<4x128xf32, #tpu.memory_space<vmem>>, vector<1x100xf32>
    %54 = vector.broadcast %53 : vector<1x100xf32> to vector<8x100xf32>
    %55 = arith.addf %52, %54 : vector<8x100xf32>
    %c1_30 = arith.constant 1 : index
    %c0_31 = arith.constant 0 : index
    %56 = vector.load %arg14[%c1_30, %c0_31] : memref<4x128xf32, #tpu.memory_space<vmem>>, vector<1x100xf32>
    %c2_32 = arith.constant 2 : index
    %c0_33 = arith.constant 0 : index
    %57 = vector.load %arg14[%c2_32, %c0_33] : memref<4x128xf32, #tpu.memory_space<vmem>>, vector<1x100xf32>
    %cst_34 = arith.constant dense<0.000000e+00> : vector<8xf32>
    %58 = vector.multi_reduction <add>, %55, %cst_34 [1] : vector<8x100xf32> to vector<8xf32>
    %59 = vector.shape_cast %58 : vector<8xf32> to vector<8x1xf32>
    %cst_35 = arith.constant 0.00999999977 : f32
    %60 = vector.broadcast %cst_35 : f32 to vector<8x1xf32>
    %61 = arith.mulf %59, %60 : vector<8x1xf32>
    %62 = arith.mulf %55, %55 : vector<8x100xf32>
    %cst_36 = arith.constant dense<0.000000e+00> : vector<8xf32>
    %63 = vector.multi_reduction <add>, %62, %cst_36 [1] : vector<8x100xf32> to vector<8xf32>
    %64 = vector.shape_cast %63 : vector<8xf32> to vector<8x1xf32>
    %cst_37 = arith.constant 0.00999999977 : f32
    %65 = vector.broadcast %cst_37 : f32 to vector<8x1xf32>
    %66 = arith.mulf %64, %65 : vector<8x1xf32>
    %67 = arith.mulf %61, %61 : vector<8x1xf32>
    %68 = arith.subf %66, %67 : vector<8x1xf32>
    %cst_38 = arith.constant 0.000000e+00 : f32
    %69 = vector.broadcast %cst_38 : f32 to vector<8x1xf32>
    %70 = arith.maximumf %68, %69 : vector<8x1xf32>
    %71 = vector.broadcast %61 : vector<8x1xf32> to vector<8x100xf32>
    %72 = arith.subf %55, %71 : vector<8x100xf32>
    %cst_39 = arith.constant 9.99999974E-6 : f32
    %73 = vector.broadcast %cst_39 : f32 to vector<8x1xf32>
    %74 = arith.addf %70, %73 : vector<8x1xf32>
    %75 = math.rsqrt %74 : vector<8x1xf32>
    %76 = vector.broadcast %75 : vector<8x1xf32> to vector<8x100xf32>
    %77 = arith.mulf %72, %76 : vector<8x100xf32>
    %78 = vector.broadcast %56 : vector<1x100xf32> to vector<8x100xf32>
    %79 = arith.mulf %77, %78 : vector<8x100xf32>
    %80 = vector.broadcast %57 : vector<1x100xf32> to vector<8x100xf32>
    %81 = arith.addf %79, %80 : vector<8x100xf32>
    %82 = arith.truncf %81 : vector<8x100xf32> to vector<8x100xbf16>
    %c0_40 = arith.constant 0 : index
    %c0_41 = arith.constant 0 : index
    %83 = vector.load %arg7[%c0_40, %c0_41] : memref<100x128xbf16, #tpu.memory_space<vmem>>, vector<100x128xbf16>
    %cst_42 = arith.constant dense<0.000000e+00> : vector<8x128xf32>
    %84 = tpu.matmul %82, %83, %cst_42 {dimension_numbers = #tpu.dot_dimension_numbers<[1], [0], [0], [1], [0, 0, 1, 1], [], []>} : vector<8x100xbf16>, vector<100x128xbf16>, vector<8x128xf32> -> vector<8x128xf32>
    %c3_43 = arith.constant 3 : index
    %c0_44 = arith.constant 0 : index
    %85 = vector.load %arg14[%c3_43, %c0_44] : memref<4x128xf32, #tpu.memory_space<vmem>>, vector<1x128xf32>
    %86 = vector.broadcast %85 : vector<1x128xf32> to vector<8x128xf32>
    %87 = arith.addf %84, %86 : vector<8x128xf32>
    %cst_45 = arith.constant 0.000000e+00 : f32
    %88 = vector.broadcast %cst_45 : f32 to vector<8x128xf32>
    %89 = arith.maximumf %87, %88 : vector<8x128xf32>
    %90 = arith.truncf %48 : vector<8x32xf32> to vector<8x32xbf16>
    %c0_46 = arith.constant 0 : index
    %c0_47 = arith.constant 0 : index
    %91 = vector.load %arg8[%c0_46, %c0_47] : memref<32x32xbf16, #tpu.memory_space<vmem>>, vector<32x32xbf16>
    %cst_48 = arith.constant dense<0.000000e+00> : vector<8x32xf32>
    %92 = tpu.matmul %90, %91, %cst_48 {dimension_numbers = #tpu.dot_dimension_numbers<[1], [0], [0], [1], [0, 0, 1, 1], [], []>} : vector<8x32xbf16>, vector<32x32xbf16>, vector<8x32xf32> -> vector<8x32xf32>
    %93 = arith.truncf %89 : vector<8x128xf32> to vector<8x128xbf16>
    %c0_49 = arith.constant 0 : index
    %c0_50 = arith.constant 0 : index
    %94 = vector.load %arg9[%c0_49, %c0_50] : memref<128x32xbf16, #tpu.memory_space<vmem>>, vector<128x32xbf16>
    %cst_51 = arith.constant dense<0.000000e+00> : vector<8x32xf32>
    %95 = tpu.matmul %93, %94, %cst_51 {dimension_numbers = #tpu.dot_dimension_numbers<[1], [0], [0], [1], [0, 0, 1, 1], [], []>} : vector<8x128xbf16>, vector<128x32xbf16>, vector<8x32xf32> -> vector<8x32xf32>
    %96 = arith.addf %92, %95 : vector<8x32xf32>
    %c5 = arith.constant 5 : index
    %c0_52 = arith.constant 0 : index
    %97 = vector.load %arg13[%c5, %c0_52] : memref<8x32xf32, #tpu.memory_space<vmem>>, vector<1x32xf32>
    %98 = vector.broadcast %97 : vector<1x32xf32> to vector<8x32xf32>
    %99 = arith.addf %96, %98 : vector<8x32xf32>
    %cst_53 = arith.constant 0.000000e+00 : f32
    %100 = vector.broadcast %cst_53 : f32 to vector<8x32xf32>
    %101 = arith.maximumf %99, %100 : vector<8x32xf32>
    %102 = arith.truncf %101 : vector<8x32xf32> to vector<8x32xbf16>
    %c0_54 = arith.constant 0 : index
    %c0_55 = arith.constant 0 : index
    %103 = vector.load %arg10[%c0_54, %c0_55] : memref<32x32xbf16, #tpu.memory_space<vmem>>, vector<32x32xbf16>
    %cst_56 = arith.constant dense<0.000000e+00> : vector<8x32xf32>
    %104 = tpu.matmul %102, %103, %cst_56 {dimension_numbers = #tpu.dot_dimension_numbers<[1], [0], [0], [1], [0, 0, 1, 1], [], []>} : vector<8x32xbf16>, vector<32x32xbf16>, vector<8x32xf32> -> vector<8x32xf32>
    %c6 = arith.constant 6 : index
    %c0_57 = arith.constant 0 : index
    %105 = vector.load %arg13[%c6, %c0_57] : memref<8x32xf32, #tpu.memory_space<vmem>>, vector<1x32xf32>
    %106 = vector.broadcast %105 : vector<1x32xf32> to vector<8x32xf32>
    %107 = arith.addf %104, %106 : vector<8x32xf32>
    %cst_58 = arith.constant 0.000000e+00 : f32
    %108 = vector.broadcast %cst_58 : f32 to vector<8x32xf32>
    %109 = arith.maximumf %107, %108 : vector<8x32xf32>
    %110 = arith.truncf %109 : vector<8x32xf32> to vector<8x32xbf16>
    %c0_59 = arith.constant 0 : index
    %c0_60 = arith.constant 0 : index
    %111 = vector.load %arg11[%c0_59, %c0_60] : memref<32x32xbf16, #tpu.memory_space<vmem>>, vector<32x32xbf16>
    %cst_61 = arith.constant dense<0.000000e+00> : vector<8x32xf32>
    %112 = tpu.matmul %110, %111, %cst_61 {dimension_numbers = #tpu.dot_dimension_numbers<[1], [0], [0], [1], [0, 0, 1, 1], [], []>} : vector<8x32xbf16>, vector<32x32xbf16>, vector<8x32xf32> -> vector<8x32xf32>
    %c7 = arith.constant 7 : index
    %c0_62 = arith.constant 0 : index
    %113 = vector.load %arg13[%c7, %c0_62] : memref<8x32xf32, #tpu.memory_space<vmem>>, vector<1x32xf32>
    %114 = vector.broadcast %113 : vector<1x32xf32> to vector<8x32xf32>
    %115 = arith.addf %112, %114 : vector<8x32xf32>
    %cst_63 = arith.constant 0.000000e+00 : f32
    %116 = vector.broadcast %cst_63 : f32 to vector<8x32xf32>
    %117 = arith.maximumf %115, %116 : vector<8x32xf32>
    %118 = arith.truncf %117 : vector<8x32xf32> to vector<8x32xbf16>
    %c0_64 = arith.constant 0 : index
    %c0_65 = arith.constant 0 : index
    %119 = vector.load %arg12[%c0_64, %c0_65] : memref<32x16xbf16, #tpu.memory_space<vmem>>, vector<32x16xbf16>
    %cst_66 = arith.constant dense<0.000000e+00> : vector<8x16xf32>
    %120 = tpu.matmul %118, %119, %cst_66 {dimension_numbers = #tpu.dot_dimension_numbers<[1], [0], [0], [1], [0, 0, 1, 1], [], []>} : vector<8x32xbf16>, vector<32x16xbf16>, vector<8x16xf32> -> vector<8x16xf32>
    %c0_67 = arith.constant 0 : index
    %c0_68 = arith.constant 0 : index
    %121 = vector.load %arg15[%c0_67, %c0_68] : memref<3x16xf32, #tpu.memory_space<vmem>>, vector<1x16xf32>
    %122 = vector.broadcast %121 : vector<1x16xf32> to vector<8x16xf32>
    %123 = arith.addf %120, %122 : vector<8x16xf32>
    %c1_69 = arith.constant 1 : index
    %c0_70 = arith.constant 0 : index
    %124 = vector.load %arg15[%c1_69, %c0_70] : memref<3x16xf32, #tpu.memory_space<vmem>>, vector<1x16xf32>
    %c2_71 = arith.constant 2 : index
    %c0_72 = arith.constant 0 : index
    %125 = vector.load %arg15[%c2_71, %c0_72] : memref<3x16xf32, #tpu.memory_space<vmem>>, vector<1x16xf32>
    %cst_73 = arith.constant dense<0.000000e+00> : vector<8xf32>
    %126 = vector.multi_reduction <add>, %123, %cst_73 [1] : vector<8x16xf32> to vector<8xf32>
    %127 = vector.shape_cast %126 : vector<8xf32> to vector<8x1xf32>
    %cst_74 = arith.constant 6.250000e-02 : f32
    %128 = vector.broadcast %cst_74 : f32 to vector<8x1xf32>
    %129 = arith.mulf %127, %128 : vector<8x1xf32>
    %130 = arith.mulf %123, %123 : vector<8x16xf32>
    %cst_75 = arith.constant dense<0.000000e+00> : vector<8xf32>
    %131 = vector.multi_reduction <add>, %130, %cst_75 [1] : vector<8x16xf32> to vector<8xf32>
    %132 = vector.shape_cast %131 : vector<8xf32> to vector<8x1xf32>
    %cst_76 = arith.constant 6.250000e-02 : f32
    %133 = vector.broadcast %cst_76 : f32 to vector<8x1xf32>
    %134 = arith.mulf %132, %133 : vector<8x1xf32>
    %135 = arith.mulf %129, %129 : vector<8x1xf32>
    %136 = arith.subf %134, %135 : vector<8x1xf32>
    %cst_77 = arith.constant 0.000000e+00 : f32
    %137 = vector.broadcast %cst_77 : f32 to vector<8x1xf32>
    %138 = arith.maximumf %136, %137 : vector<8x1xf32>
    %139 = vector.broadcast %129 : vector<8x1xf32> to vector<8x16xf32>
    %140 = arith.subf %123, %139 : vector<8x16xf32>
    %cst_78 = arith.constant 9.99999974E-6 : f32
    %141 = vector.broadcast %cst_78 : f32 to vector<8x1xf32>
    %142 = arith.addf %138, %141 : vector<8x1xf32>
    %143 = math.rsqrt %142 : vector<8x1xf32>
    %144 = vector.broadcast %143 : vector<8x1xf32> to vector<8x16xf32>
    %145 = arith.mulf %140, %144 : vector<8x16xf32>
    %146 = vector.broadcast %124 : vector<1x16xf32> to vector<8x16xf32>
    %147 = arith.mulf %145, %146 : vector<8x16xf32>
    %148 = vector.broadcast %125 : vector<1x16xf32> to vector<8x16xf32>
    %149 = arith.addf %147, %148 : vector<8x16xf32>
    %150 = math.tanh %149 : vector<8x16xf32>
    %c0_79 = arith.constant 0 : index
    %c0_80 = arith.constant 0 : index
    %151 = vector.load %arg16[%c0_79, %c0_80] : memref<8x16xf32, #tpu.memory_space<vmem>>, vector<8x16xf32>
    tpu.vector_store %arg16[%c0_79, %c0_80], %150 {strides = array<i32>} : memref<8x16xf32, #tpu.memory_space<vmem>>, vector<8x16xf32>,
    return
  }
  func.func @transform_0(%arg0: i32) -> (i32, i32) {
    %c0_i32 = arith.constant 0 : i32
    %c0_i32_0 = arith.constant 0 : i32
    return %arg0, %c0_i32 : i32, i32
  }
  func.func @transform_1(%arg0: i32) -> (i32, i32) {
    %c0_i32 = arith.constant 0 : i32
    %c0_i32_0 = arith.constant 0 : i32
    return %arg0, %c0_i32 : i32, i32
  }
  func.func @transform_2(%arg0: i32) -> (i32, i32) {
    %c0_i32 = arith.constant 0 : i32
    %c0_i32_0 = arith.constant 0 : i32
    %c0_i32_1 = arith.constant 0 : i32
    return %c0_i32, %c0_i32_0 : i32, i32
  }
  func.func @transform_3(%arg0: i32) -> (i32, i32) {
    %c0_i32 = arith.constant 0 : i32
    %c0_i32_0 = arith.constant 0 : i32
    %c0_i32_1 = arith.constant 0 : i32
    return %c0_i32, %c0_i32_0 : i32, i32
  }
  func.func @transform_4(%arg0: i32) -> (i32, i32) {
    %c0_i32 = arith.constant 0 : i32
    %c0_i32_0 = arith.constant 0 : i32
    %c0_i32_1 = arith.constant 0 : i32
    return %c0_i32, %c0_i32_0 : i32, i32
  }
  func.func @transform_5(%arg0: i32) -> (i32, i32) {
    %c0_i32 = arith.constant 0 : i32
    %c0_i32_0 = arith.constant 0 : i32
    %c0_i32_1 = arith.constant 0 : i32
    return %c0_i32, %c0_i32_0 : i32, i32
  }
  func.func @transform_6(%arg0: i32) -> (i32, i32) {
    %c0_i32 = arith.constant 0 : i32
    %c0_i32_0 = arith.constant 0 : i32
    %c0_i32_1 = arith.constant 0 : i32
    return %c0_i32, %c0_i32_0 : i32, i32
  }
  func.func @transform_7(%arg0: i32) -> (i32, i32) {
    %c0_i32 = arith.constant 0 : i32
    %c0_i32_0 = arith.constant 0 : i32
    %c0_i32_1 = arith.constant 0 : i32
    return %c0_i32, %c0_i32_0 : i32, i32
  }
  func.func @transform_8(%arg0: i32) -> (i32, i32) {
    %c0_i32 = arith.constant 0 : i32
    %c0_i32_0 = arith.constant 0 : i32
    %c0_i32_1 = arith.constant 0 : i32
    return %c0_i32, %c0_i32_0 : i32, i32
  }
  func.func @transform_9(%arg0: i32) -> (i32, i32) {
    %c0_i32 = arith.constant 0 : i32
    %c0_i32_0 = arith.constant 0 : i32
    %c0_i32_1 = arith.constant 0 : i32
    return %c0_i32, %c0_i32_0 : i32, i32
  }
  func.func @transform_10(%arg0: i32) -> (i32, i32) {
    %c0_i32 = arith.constant 0 : i32
    %c0_i32_0 = arith.constant 0 : i32
    %c0_i32_1 = arith.constant 0 : i32
    return %c0_i32, %c0_i32_0 : i32, i32
  }
  func.func @transform_11(%arg0: i32) -> (i32, i32) {
    %c0_i32 = arith.constant 0 : i32
    %c0_i32_0 = arith.constant 0 : i32
    %c0_i32_1 = arith.constant 0 : i32
    return %c0_i32, %c0_i32_0 : i32, i32
  }
  func.func @transform_12(%arg0: i32) -> (i32, i32) {
    %c0_i32 = arith.constant 0 : i32
    %c0_i32_0 = arith.constant 0 : i32
    %c0_i32_1 = arith.constant 0 : i32
    return %c0_i32, %c0_i32_0 : i32, i32
  }
  func.func @transform_13(%arg0: i32) -> (i32, i32) {
    %c0_i32 = arith.constant 0 : i32
    %c0_i32_0 = arith.constant 0 : i32
    %c0_i32_1 = arith.constant 0 : i32
    return %c0_i32, %c0_i32_0 : i32, i32
  }
  func.func @transform_14(%arg0: i32) -> (i32, i32) {
    %c0_i32 = arith.constant 0 : i32
    %c0_i32_0 = arith.constant 0 : i32
    %c0_i32_1 = arith.constant 0 : i32
    return %c0_i32, %c0_i32_0 : i32, i32
  }
  func.func @transform_15(%arg0: i32) -> (i32, i32) {
    %c0_i32 = arith.constant 0 : i32
    %c0_i32_0 = arith.constant 0 : i32
    return %arg0, %c0_i32 : i32, i32
  }
}

</mosaic_0001>

<bundles_post_ra>
// kernel: forward_dynamics_head.1
= control target key start
LH: loop header
LB: loop body
LE: loop exit
PB: predicated region body
PF: predicated region fallthrough
CT: control target
= control target key end

     0   :  { %v1128_v1 = vmov 0.0   ;;  %vm67_vm0 = vcmask 130048   ;;  %vm1129_vm1 = vmmov 0   ;;  %s1431_s0 = inlined_call_operand.vmem [shape: f32[8,16], index: 0, kind: input, shape index: {}]   ;;  %s1432_s1 = inlined_call_operand.vmem [shape: f32[8,8], index: 1, kind: input, shape index: {}]   ;;  %s1433_s2 = inlined_call_operand.vmem [shape: bf16[16,32], index: 2, kind: input, shape index: {}]   ;;  %s1434_s3 = inlined_call_operand.vmem [shape: bf16[32,32], index: 3, kind: input, shape index: {}]   ;;  %s1435_s4 = inlined_call_operand.vmem [shape: bf16[32,32], index: 4, kind: input, shape index: {}]   ;;  %s1436_s5 = inlined_call_operand.vmem [shape: bf16[8,100], index: 5, kind: input, shape index: {}]   ;;  %s1437_s6 = inlined_call_operand.vmem [shape: bf16[100,128], index: 6, kind: input, shape index: {}]   ;;  %s1438_s7 = inlined_call_operand.vmem [shape: bf16[32,32], index: 7, kind: input, shape index: {}]   ;;  %s1439_s8 = inlined_call_operand.vmem [shape: bf16[128,32], index: 8, kind: input, shape index: {}]   ;;  %s1440_s9 = inlined_call_operand.vmem [shape: bf16[32,32], index: 9, kind: input, shape index: {}]   ;;  %s1441_s10 = inlined_call_operand.vmem [shape: bf16[32,32], index: 10, kind: input, shape index: {}]   ;;  %s1442_s11 = inlined_call_operand.vmem [shape: bf16[32,16], index: 11, kind: input, shape index: {}]   ;;  %s1443_s12 = inlined_call_operand.vmem [shape: f32[8,32], index: 12, kind: input, shape index: {}]   ;;  %s1444_s13 = inlined_call_operand.vmem [shape: f32[4,128], index: 13, kind: input, shape index: {}]   ;;  %s1445_s14 = inlined_call_operand.vmem [shape: f32[3,16], index: 14, kind: input, shape index: {}]   ;;  %s1446_s15 = inlined_call_operand.hbm [shape: f32[8,16], index: 15, kind: output, shape index: {}]  }
   0x1   :  { %v1068_v0 = vld [vmem:[%s1433_s2] sm:$0xff]   ;;  %967 = vmatprep.subr.bf16.mxu1 %v1128_v1  ;;  %981 = vmatprep.subr.bf16.mxu0 %v1128_v1 }
   0x2   :  { %v52_v2 = vld [vmem:[%s1431_s0] sm:$0xff]  ;;  %968 = vmatpush3.bf16.msra.mxu1 %v1068_v0  ;;  %969 = vmatprep.mubr.msk.bf16.mxu1 %vm1129_vm1, %v1128_v1 }
   0x3   :  { %v53_v3 = vpack.c.bf16 %v52_v2, %v52_v2  ;;  %973 = vmatprep.subr.bf16.mxu1 %v1128_v1  ;;  %985 = vmatprep.mubr.msk.bf16.mxu0 %vm1129_vm1, %v1128_v1 }
   0x5   :  { %970 = vmatmul.mubr.msk.bf16.vlgmr.msra.gmra.mrb[0].mxu1 %vm67_vm0, %v53_v3 }
   0x6   :  { %977 = vmatprep.mubr.msk.bf16.mxu1 %vm1129_vm1, %v1128_v1 }
   0x7   :  { %20 = vsyncpa [#allocation3], 0  ;;  %v876_v4 = vld [vmem:[%s1443_s12] ss:$0 sm:$0xff]  ;;  %vm113_vm2 = vcmask 261120   ;;  %v1070_v14 = vld [vmem:[%s1434_s3 + $0x8] sm:$0xff]  }
   0x8   :  { %v1069_v13 = vld [vmem:[%s1434_s3] sm:$0xff]   ;;  %vm284_vm3 = vcmask 1043456   ;;  %vm280_vm4 = vcmask 64512   ;;  %v1072_v36 = vld [vmem:[%s1435_s4 + $0x8] sm:$0xff]   ;;  %vm330_vm5 = vcmask 818176   ;;  %v1075_v56 = vld [vmem:[%s1437_s6 + $0x10] sm:$0xff]  }
   0x9   :  { %974 = vmatpush3.bf16.msra.mxu1 %v1069_v13  ;;  %v879_v25 = vld [vmem:[%s1443_s12 + $0x1] ss:$0 sm:$0xff]  ;;  %v880_v27 = vld [vmem:[%s1443_s12 + $0x2] ss:$0 sm:$0xff]  ;;  %v881_v37 = vld [vmem:[%s1443_s12 + $0x3] ss:$0 sm:$0xff] }
   0xa   :  { %975 = vmatprep.subr.bf16.mxu1 %v1128_v1  ;;  %v274_v29 = vld [vmem:[%s1436_s5] sm:$0xf]  ;;  %v1074_v55 = vld [vmem:[%s1437_s6 + $0x8] sm:$0xff]   ;;  %v1076_v57 = vld [vmem:[%s1437_s6 + $0x18] sm:$0xff]   ;;  %vm418_vm6 = vcmask 1041408   ;;  %s1130_s18 = smov [#allocation2]  }
   0xb   :  { %v286_v32 = vsel %vm284_vm3, %v274_v29, 0  ;;  %v272_v33 = vld [vmem:[%s1432_s1] sm:$0xff]  ;;  %v1078_v59 = vld [vmem:[%s1437_s6 + $0x28] sm:$0xff]   ;;  %v1079_v60 = vld [vmem:[%s1437_s6 + $0x30] ss:$0 sps:$4 sm:$0x33]  }
   0xc   :  { %v273_v34 = vpack.c.bf16 %v272_v33, %v272_v33  ;;  %v1071_v35 = vld [vmem:[%s1435_s4] sm:$0xff]   ;;  %v420_v61 = vsel %vm418_vm6, %v1079_v60, 0  ;;  %v1083_v63 = vld [vmem:[%s1439_s8 + $0x8] sm:$0xff]   ;;  %v1084_v0 = vld [vmem:[%s1439_s8 + $0x10] sm:$0xff]   ;;  %s868_s19 = sshll.u32 %s1130_s18, 4  ;;  %s869_s19 = int_to_ptr.vmem [resolvable:$true] %s868_s19 }
   0xd   :  { %976 = vmatpush3.bf16.msra.mxu1 %v1070_v14  ;;  %982 = vmatpush3.bf16.msra.mxu0 %v1071_v35  ;;  %v889_v45 = vld [vmem:[%s1444_s13] ss:$0 sm:$0xff]  ;;  %v1085_v2 = vld [vmem:[%s1439_s8 + $0x18] sm:$0xff]   ;;  %v893_v33 = vld [vmem:[%s1444_s13 + $0x3] ss:$0 sm:$0xff]  ;;  %s1104_s20 = scalar_lea.vmem %s869_s19, 128  ;;  %p1109_p1 = scmp.lt.s32.totalorder %s869_s19, %s869_s19 }
   0xe   :  { %989 = vmatprep.subr.bf16.mxu1 %v1128_v1  ;;  %983 = vmatprep.subr.bf16.mxu0 %v1128_v1  ;;  %v1073_v54 = vld [vmem:[%s1437_s6] sm:$0xff]   ;;  %p1105_p0 = scmp.ne.s32.totalorder %s869_s19, %s1104_s20  ;;  %p1110_p2 = scmp.lt.s32.totalorder %s1104_s20, %s1104_s20 }
   0xf   :  { %v1077_v58 = vld [vmem:[%s1437_s6 + $0x20] sm:$0xff]  }
  0x10   :  { %v1082_v62 = vld [vmem:[%s1439_s8] sm:$0xff]   ;;  %p1111_p3 = por %p1110_p2, %p1109_p1 }
  0x11   :  { %984 = vmatpush3.bf16.msra.mxu0 %v1072_v36  ;;  %v1086_v3 = vld [vmem:[%s1439_s8 + $0x20] sm:$0xff]  }
  0x12   :  { %995 = vmatprep.subr.bf16.mxu0 %v1128_v1  ;;  %p1112_p4 = pnand %p1111_p3, %p1105_p0 }
  0xd8   :  { %v105_v5 = vpop.f32.mrb[0].mxu1 }
  0xd9   :  { %v106_v6 = vadd.f32 %v876_v4, %v105_v5  ;;  %v971_v7 = vpop.f32.mrb[1].mxu1  ;;  %v1087_v4 = vld [vmem:[%s1439_s8 + $0x28] sm:$0xff]  }
  0xda   :  { %v108_v8 = vpop.f32.mrb[2].mxu1 }
  0xdb   :  { %v972_v9 = vpop.f32.mrb[3].mxu1  ;;  %v114_v10 = vsel %vm113_vm2, %v106_v6, 0.0  ;;  %v118_v11 = vmul.f32 %v106_v6, %v106_v6 }
  0xdc   :  { %115 = vadd.xlane.f32.xlu0 %v114_v10 }
  0xdd   :  { %v119_v12 = vsel %vm113_vm2, %v118_v11, 0.0 }
  0xe0   :  { %120 = vadd.xlane.f32.xlu0 %v119_v12 }
 0x169   :  { %v116_v15 = vpop.xlane.xlu0 %115 }
 0x16a   :  { %v117_v16 = vmul.f32 0.03125, %v116_v15  ;;  %v891_v15 = vld [vmem:[%s1444_s13 + $0x1] ss:$0 sm:$0xff] }
 0x16c   :  { %v123_v18 = vmul.f32 %v117_v16, %v117_v16  ;;  %v126_v23 = vsub.f32 %v106_v6, %v117_v16 }
 0x16d   :  { %v121_v17 = vpop.xlane.xlu0 %120 }
 0x16e   :  { %v122_v19 = vmul.f32 0.03125, %v121_v17  ;;  %v892_v17 = vld [vmem:[%s1444_s13 + $0x2] ss:$0 sm:$0xff] }
 0x170   :  { %v124_v20 = vsub.f32 %v122_v19, %v123_v18 }
 0x172   :  { %v125_v21 = vmax.f32 %v124_v20, 0.0  ;;  %v1080_v20 = vld [vmem:[%s1438_s7] sm:$0xff]  }
 0x174   :  { %v127_v22 = vadd.f32 1e-05, %v125_v21 }
 0x176   :  { %1096 = vrsqrt.f32 %v127_v22  ;;  %v1081_v22 = vld [vmem:[%s1438_s7 + $0x8] sm:$0xff]  }
 0x180   :  { %v1097_v24 = vpop.eup %1096 }
 0x181   :  { %v129_v26 = vmul.f32 %v1097_v24, %v126_v23  ;;  %v885_v23 = vld [vmem:[%s1443_s12 + $0x4] ss:$0 sm:$0xff] }
 0x183   :  { %v134_v28 = vmul.f32 %v879_v25, %v129_v26 }
 0x185   :  { %v139_v30 = vadd.f32 %v880_v27, %v134_v28 }
 0x187   :  { %v140_v31 = vpack.c.bf16 %v139_v30, %v139_v30 }
 0x189   :  { %978 = vmatmul.mubr.msk.bf16.vlgmr.msra.gmra.mrb[4].mxu1 %vm113_vm2, %v140_v31  ;;  %v1088_v31 = vld [vmem:[%s1439_s8 + $0x30] sm:$0xff]  }
 0x18a   :  { %990 = vmatpush3.bf16.msra.mxu1 %v286_v32  ;;  %991 = vmatprep.mubr.msk.bf16.mxu1 %vm1129_vm1, %v1128_v1  ;;  %v1089_v32 = vld [vmem:[%s1439_s8 + $0x38] sm:$0xff]  }
 0x18b   :  { %1013 = vmatprep.subr.bf16.mxu1 %v1128_v1 }
 0x191   :  { %992 = vmatmul.mubr.msk.bf16.vlgmr.msra.gmra.mrb[8].mxu1 %vm280_vm4, %v273_v34 }
 0x192   :  { %1029 = vmatprep.mubr.msk.bf16.mxu1 %vm1129_vm1, %v1128_v1  ;;  %1014 = vmatpush3.bf16.msra.mxu1 %v1082_v62 }
 0x193   :  { %1015 = vmatprep.subr.bf16.mxu1 %v1128_v1 }
 0x196   :  { %1016 = vmatpush3.bf16.msra.mxu1 %v1083_v63 }
 0x197   :  { %1017 = vmatprep.subr.bf16.mxu1 %v1128_v1 }
 0x19a   :  { %1018 = vmatpush3.bf16.msra.mxu1 %v1084_v0 }
 0x19b   :  { %1019 = vmatprep.subr.bf16.mxu1 %v1128_v1 }
 0x19e   :  { %1020 = vmatpush3.bf16.msra.mxu1 %v1085_v2 }
 0x19f   :  { %1021 = vmatprep.subr.bf16.mxu1 %v1128_v1 }
 0x1a2   :  { %1022 = vmatpush3.bf16.msra.mxu1 %v1086_v3 }
 0x1a3   :  { %1023 = vmatprep.subr.bf16.mxu1 %v1128_v1 }
 0x1a6   :  { %1024 = vmatpush3.bf16.msra.mxu1 %v1087_v4  ;;  %v1095_v4 = vld [vmem:[%s1442_s11 + $0x8] sm:$0xff]  }
 0x1a7   :  { %1025 = vmatprep.subr.bf16.mxu1 %v1128_v1 }
 0x1aa   :  { %1026 = vmatpush3.bf16.msra.mxu1 %v1088_v31  ;;  %v926_v31 = vld [vmem:[%s1445_s14 + $0x1] ss:$0 sm:$0xff] }
 0x1ab   :  { %1027 = vmatprep.subr.bf16.mxu1 %v1128_v1 }
 0x1ae   :  { %1028 = vmatpush3.bf16.msra.mxu1 %v1089_v32 }
 0x1af   :  { %1049 = vmatprep.subr.bf16.mxu1 %v1128_v1 }
 0x25c   :  { %v199_v38 = vpop.f32.mrb[4].mxu1 }
 0x25d   :  { %v200_v39 = vadd.f32 %v881_v37, %v199_v38  ;;  %v979_v40 = vpop.f32.mrb[5].mxu1 }
 0x25e   :  { %v202_v41 = vpop.f32.mrb[6].mxu1 }
 0x25f   :  { %v205_v42 = vmax.f32 %v200_v39, 0.0  ;;  %v980_v43 = vpop.f32.mrb[7].mxu1 }
 0x261   :  { %v206_v44 = vpack.c.bf16 %v205_v42, %v205_v42 }
 0x263   :  { %986 = vmatmul.mubr.msk.bf16.vlgmr.msra.gmra.mrb[0].mxu0 %vm113_vm2, %v206_v44 }
 0x264   :  { %v322_v46 = vpop.f32.mrb[8].mxu1  ;;  %1009 = vmatprep.mubr.msk.bf16.mxu0 %vm1129_vm1, %v1128_v1  ;;  %996 = vmatpush3.bf16.msra.mxu0 %v1073_v54 }
 0x265   :  { %v1275_v47 = vadd.f32 %v889_v45, %v322_v46  ;;  %v993_v48 = vpop.f32.mrb[9].mxu1  ;;  %997 = vmatprep.subr.bf16.mxu0 %v1128_v1  ;;  %v1090_v45 = vld [vmem:[%s1440_s9] sm:$0xff]   ;;  %v1091_v46 = vld [vmem:[%s1440_s9 + $0x8] sm:$0xff]  }
 0x266   :  { %v325_v49 = vpop.f32.mrb[10].mxu1 }
 0x267   :  { %v994_v50 = vpop.f32.mrb[11].mxu1  ;;  %v331_v51 = vsel %vm330_vm5, %v1275_v47, 0.0  ;;  %v335_v52 = vmul.f32 %v1275_v47, %v1275_v47  ;;  %v913_v49 = vld [vmem:[%s1443_s12 + $0x5] ss:$0 sm:$0xff] }
 0x268   :  { %332 = vadd.xlane.f32.xlu1 %v331_v51  ;;  %998 = vmatpush3.bf16.msra.mxu0 %v1074_v55 }
 0x269   :  { %v336_v53 = vsel %vm330_vm5, %v335_v52, 0.0  ;;  %999 = vmatprep.subr.bf16.mxu0 %v1128_v1 }
 0x26c   :  { %337 = vadd.xlane.f32.xlu1 %v336_v53  ;;  %1000 = vmatpush3.bf16.msra.mxu0 %v1075_v56 }
 0x26d   :  { %1001 = vmatprep.subr.bf16.mxu0 %v1128_v1 }
 0x270   :  { %1002 = vmatpush3.bf16.msra.mxu0 %v1076_v57  ;;  %v1093_v57 = vld [vmem:[%s1441_s10 + $0x8] sm:$0xff]  }
 0x271   :  { %1003 = vmatprep.subr.bf16.mxu0 %v1128_v1 }
 0x274   :  { %1004 = vmatpush3.bf16.msra.mxu0 %v1077_v58  ;;  %v1094_v58 = vld [vmem:[%s1442_s11] sm:$0xff]  }
 0x275   :  { %1005 = vmatprep.subr.bf16.mxu0 %v1128_v1 }
 0x278   :  { %1006 = vmatpush3.bf16.msra.mxu0 %v1078_v59  ;;  %v914_v59 = vld [vmem:[%s1443_s12 + $0x6] ss:$0 sm:$0xff] }
 0x279   :  { %1007 = vmatprep.subr.bf16.mxu0 %v1128_v1 }
 0x27c   :  { %1008 = vmatpush3.bf16.msra.mxu0 %v420_v61 }
 0x27d   :  { %1033 = vmatprep.subr.bf16.mxu0 %v1128_v1 }
 0x2f5   :  { %v333_v5 = vpop.xlane.xlu1 %332 }
 0x2f6   :  { %v334_v6 = vmul.f32 0.01, %v333_v5 }
 0x2f8   :  { %v340_v8 = vmul.f32 %v334_v6, %v334_v6  ;;  %v343_v13 = vsub.f32 %v1275_v47, %v334_v6  ;;  %v1092_v47 = vld [vmem:[%s1441_s10] sm:$0xff]  }
 0x2f9   :  { %v338_v7 = vpop.xlane.xlu1 %337 }
 0x2fa   :  { %v339_v9 = vmul.f32 0.01, %v338_v7 }
 0x2fc   :  { %v341_v10 = vsub.f32 %v339_v9, %v340_v8 }
 0x2fe   :  { %v342_v11 = vmax.f32 %v341_v10, 0.0 }
 0x300   :  { %v344_v12 = vadd.f32 1e-05, %v342_v11 }
 0x302   :  { %1098 = vrsqrt.f32 %v344_v12  ;;  %v922_v12 = vld [vmem:[%s1445_s14] ss:$0 sm:$0xff] }
 0x30c   :  { %v1099_v14 = vpop.eup %1098 }
 0x30d   :  { %v346_v16 = vmul.f32 %v1099_v14, %v343_v13 }
 0x30f   :  { %v351_v18 = vmul.f32 %v891_v15, %v346_v16 }
 0x311   :  { %v356_v19 = vadd.f32 %v892_v17, %v351_v18 }
 0x313   :  { %v357_v21 = vpack.c.bf16 %v356_v19, %v356_v19 }
 0x315   :  { %1010 = vmatmul.mubr.msk.bf16.vlgmr.msra.gmra.mrb[4].mxu0 %vm330_vm5, %v357_v21 }
 0x316   :  { %1034 = vmatpush3.bf16.msra.mxu0 %v1080_v20  ;;  %1037 = vmatprep.mubr.msk.bf16.mxu0 %vm1129_vm1, %v1128_v1 }
 0x317   :  { %1035 = vmatprep.subr.bf16.mxu0 %v1128_v1 }
 0x31a   :  { %1036 = vmatpush3.bf16.msra.mxu0 %v1081_v22 }
 0x31b   :  { %1041 = vmatprep.subr.bf16.mxu0 %v1128_v1 }
 0x336   :  { %v265_v24 = vpop.f32.mrb[0].mxu0 }
 0x337   :  { %v266_v25 = vadd.f32 %v885_v23, %v265_v24  ;;  %v987_v26 = vpop.f32.mrb[1].mxu0 }
 0x338   :  { %v268_v27 = vpop.f32.mrb[2].mxu0 }
 0x339   :  { %v271_v28 = vmax.f32 %v266_v25, 0.0  ;;  %v988_v29 = vpop.f32.mrb[3].mxu0 }
 0x33b   :  { %v463_v30 = vpack.c.bf16 %v271_v28, %v271_v28 }
 0x33d   :  { %1038 = vmatmul.mubr.msk.bf16.vlgmr.msra.gmra.mrb[8].mxu0 %vm113_vm2, %v463_v30 }
 0x33e   :  { %1045 = vmatprep.mubr.msk.bf16.mxu0 %vm1129_vm1, %v1128_v1  ;;  %1042 = vmatpush3.bf16.msra.mxu0 %v1090_v45 }
 0x33f   :  { %1043 = vmatprep.subr.bf16.mxu0 %v1128_v1 }
 0x342   :  { %1044 = vmatpush3.bf16.msra.mxu0 %v1091_v46 }
 0x343   :  { %1057 = vmatprep.subr.bf16.mxu0 %v1128_v1 }
 0x3e8   :  { %v456_v34 = vpop.f32.mrb[4].mxu0 }
 0x3e9   :  { %v457_v35 = vadd.f32 %v893_v33, %v456_v34  ;;  %v1011_v36 = vpop.f32.mrb[5].mxu0  ;;  %v927_v33 = vld [vmem:[%s1445_s14 + $0x2] ss:$0 sm:$0xff] }
 0x3ea   :  { %v459_v37 = vpop.f32.mrb[6].mxu0 }
 0x3eb   :  { %v462_v38 = vmax.f32 %v457_v35, 0.0  ;;  %v1012_v39 = vpop.f32.mrb[7].mxu0 }
 0x3ed   :  { %v468_v40 = vpack.c.bf16 %v462_v38, %v462_v38 }
 0x3ef   :  { %1030 = vmatmul.mubr.bf16.vlgmr.msra.gmra.mrb[12].mxu1 %v468_v40 }
 0x3f0   :  { %1053 = vmatprep.mubr.msk.bf16.mxu1 %vm1129_vm1, %v1128_v1  ;;  %1050 = vmatpush3.bf16.msra.mxu1 %v1092_v47 }
 0x3f1   :  { %1051 = vmatprep.subr.bf16.mxu1 %v1128_v1 }
 0x3f4   :  { %1052 = vmatpush3.bf16.msra.mxu1 %v1093_v57 }
 0x410   :  { %v622_v41 = vpop.f32.mrb[8].mxu0 }
 0x411   :  { %v1039_v42 = vpop.f32.mrb[9].mxu0 }
 0x412   :  { %v625_v43 = vpop.f32.mrb[10].mxu0 }
 0x413   :  { %v1040_v44 = vpop.f32.mrb[11].mxu0 }
 0x4c2   :  { %v567_v48 = vpop.f32.mrb[12].mxu1 }
 0x4c3   :  { %v623_v50 = vadd.f32 %v622_v41, %v567_v48  ;;  %v1031_v51 = vpop.f32.mrb[13].mxu1 }
 0x4c4   :  { %v570_v52 = vpop.f32.mrb[14].mxu1 }
 0x4c5   :  { %v633_v53 = vadd.f32 %v913_v49, %v623_v50  ;;  %v1032_v54 = vpop.f32.mrb[15].mxu1 }
 0x4c7   :  { %v634_v55 = vmax.f32 %v633_v53, 0.0 }
 0x4c9   :  { %v635_v56 = vpack.c.bf16 %v634_v55, %v634_v55 }
 0x4cb   :  { %1046 = vmatmul.mubr.msk.bf16.vlgmr.msra.gmra.mrb[12].mxu0 %vm113_vm2, %v635_v56 }
 0x4cc   :  { %1061 = vmatprep.mubr.msk.bf16.mxu0 %vm1129_vm1, %v1128_v1  ;;  %1058 = vmatpush3.bf16.msra.mxu0 %v1094_v58 }
 0x4cd   :  { %1059 = vmatprep.subr.bf16.mxu0 %v1128_v1  ;;  %v918_v1 = vld [vmem:[%s1443_s12 + $0x7] ss:$0 sm:$0xff] }
 0x4d0   :  { %1060 = vmatpush3.bf16.msra.mxu0 %v1095_v4 }
 0x59e   :  { %v694_v60 = vpop.f32.mrb[12].mxu0 }
 0x59f   :  { %v695_v61 = vadd.f32 %v914_v59, %v694_v60  ;;  %v1047_v62 = vpop.f32.mrb[13].mxu0 }
 0x5a0   :  { %v697_v63 = vpop.f32.mrb[14].mxu0 }
 0x5a1   :  { %v700_v0 = vmax.f32 %v695_v61, 0.0  ;;  %v1048_v2 = vpop.f32.mrb[15].mxu0 }
 0x5a3   :  { %v701_v3 = vpack.c.bf16 %v700_v0, %v700_v0 }
 0x5a5   :  { %1054 = vmatmul.mubr.msk.bf16.vlgmr.msra.gmra.mrb[16].mxu1 %vm113_vm2, %v701_v3 }
 0x678   :  { %v760_v5 = vpop.f32.mrb[16].mxu1 }
 0x679   :  { %v761_v6 = vadd.f32 %v918_v1, %v760_v5  ;;  %v1055_v7 = vpop.f32.mrb[17].mxu1 }
 0x67a   :  { %v763_v8 = vpop.f32.mrb[18].mxu1 }
 0x67b   :  { %v766_v9 = vmax.f32 %v761_v6, 0.0  ;;  %v1056_v10 = vpop.f32.mrb[19].mxu1 }
 0x67d   :  { %v767_v11 = vpack.c.bf16 %v766_v9, %v766_v9 }
 0x67f   :  { %1062 = vmatmul.mubr.msk.bf16.vlgmr.msra.gmra.mrb[16].mxu0 %vm113_vm2, %v767_v11 }
 0x752   :  { %v826_v13 = vpop.f32.mrb[16].mxu0 }
 0x753   :  { %v827_v14 = vadd.f32 %v922_v12, %v826_v13  ;;  %v1063_v15 = vpop.f32.mrb[17].mxu0 }
 0x754   :  { %v829_v16 = vpop.f32.mrb[18].mxu0 }
 0x755   :  { %v1064_v17 = vpop.f32.mrb[19].mxu0  ;;  %v834_v18 = vsel %vm67_vm0, %v827_v14, 0.0  ;;  %v838_v19 = vmul.f32 %v827_v14, %v827_v14 }
 0x756   :  { %835 = vadd.xlane.f32.xlu0 %v834_v18 }
 0x757   :  { %v839_v20 = vsel %vm67_vm0, %v838_v19, 0.0 }
 0x758   :  { %840 = vadd.xlane.f32.xlu1 %v839_v20 }
 0x7e3   :  { %v836_v21 = vpop.xlane.xlu0 %835 }
 0x7e4   :  { %v837_v22 = vmul.f32 0.0625, %v836_v21 }
 0x7e5   :  { %v841_v23 = vpop.xlane.xlu1 %840 }
 0x7e6   :  { %v843_v24 = vmul.f32 %v837_v22, %v837_v22  ;;  %v842_v25 = vmul.f32 0.0625, %v841_v23  ;;  %v846_v29 = vsub.f32 %v827_v14, %v837_v22 }
 0x7e8   :  { %v844_v26 = vsub.f32 %v842_v25, %v843_v24 }
 0x7ea   :  { %v845_v27 = vmax.f32 %v844_v26, 0.0 }
 0x7ec   :  { %v847_v28 = vadd.f32 1e-05, %v845_v27 }
 0x7ee   :  { %1100 = vrsqrt.f32 %v847_v28 }
 0x7f8   :  { %v1101_v30 = vpop.eup %1100 }
 0x7f9   :  { %v849_v32 = vmul.f32 %v1101_v30, %v846_v29 }
 0x7fb   :  { %v854_v34 = vmul.f32 %v926_v31, %v849_v32 }
 0x7fd   :  { %v859_v35 = vadd.f32 %v927_v33, %v854_v34 }
 0x7ff   :  { %1102 = vtanh.f32 %v859_v35 }
 0x809   :  { %v1103_v36 = vpop.eup %1102 }
 0x80a   :  { %861 = vst.msk [vmem:[#allocation2] sm:$0xff] %vm67_vm0, %v1103_v36 }
 0x80b   :  { %1115 = shalt.err (!%p1112_p4)
}
 0x80c   :  { %s1116_s14 = scalar_lea.hbm %s1446_s15, 128 }
 0x80d   :  { %p1117_p5 = scmp.ne.s32.totalorder %s1446_s15, %s1116_s14  ;;  %p1120_p6 = scmp.lt.u32.totalorder %s1116_s14, %s1446_s15 }
 0x80f   :  { %p1122_p7 = pnand %p1120_p6, %p1117_p5 }
 0x811   :  { %1125 = shalt.err (!%p1122_p7)
}
 0x812   :  { %871 = dma.vmem_to_hbm [thread:$0]  %s869_s19, 128, %s1446_s15, [#allocation3]  }
 0x813   :  { %1126 = dma.done.wait [#allocation3], 128  }
 0x814   :  { %1127 = vsyncadd [#allocation3], 4294967168 }
 0x815   :  { %875 = vsyncpa [#allocation3], 1 }

</bundles_post_ra>
